<compile_context>
chip_gen: v5e
topology: v5e:2x2
jax: 0.10.0
libtpu: 0.0.40
codegen_flags: <defaults>
</compile_context>

<pallas_src>
import functools

import jax
import jax.numpy as jnp
from jax.experimental import pallas as pl
from jax.experimental.pallas import tpu as pltpu


def _round_up(n, m):
    return ((n + m - 1) // m) * m


def _qnet_kernel(x_ref, w1_ref, b1_ref, w2_ref, b2_ref, o_ref):
    """out = relu(x @ w1 + b1) @ w2 + b2 for one (TB, D) batch tile, all f32."""
    h = jnp.dot(x_ref[...], w1_ref[...], preferred_element_type=jnp.float32)  # (TB, H)
    h = jnp.maximum(h + b1_ref[...], 0.0)                                      # bias + ReLU (VPU)
    y = jnp.dot(h, w2_ref[...], preferred_element_type=jnp.float32)           # (TB, A)
    o_ref[...] = (y + b2_ref[...]).astype(o_ref.dtype)


@functools.partial(jax.jit, static_argnames=("block_b",))
def qnetwork_forward(x, w1, b1, w2, b2, *, block_b=2048):
    """x: (B, state_dim) f32; w1: (state_dim, 64); b1: (64,); w2: (64, A); b2: (A,).

    Weights are passed pre-transposed relative to PyTorch, i.e. (in, out).
    """
    B, D = x.shape
    H = w1.shape[1]
    A = w2.shape[1]

    # Batch tile: large enough to amortize per-step overhead, multiple of 16,
    # and capped at ceil(B/2) so big batches produce >= 2 grid steps (lets the
    # "parallel" axis shard across both TensorCores on v7x).
    TB = max(16, min(block_b, _round_up(pl.cdiv(B, 2), 16)))
    B_pad = _round_up(B, TB)
    if B_pad != B:
        # Padded rows compute relu(b1) @ w2 + b2 but are sliced off below.
        x = jnp.pad(x, ((0, B_pad - B), (0, 0)))

    b1_2d = b1.reshape(1, H).astype(jnp.float32)
    b2_2d = b2.reshape(1, A).astype(jnp.float32)

    grid = (B_pad // TB,)
    out = pl.pallas_call(
        _qnet_kernel,
        out_shape=jax.ShapeDtypeStruct((B_pad, A), jnp.float32),
        grid_spec=pltpu.PrefetchScalarGridSpec(
            num_scalar_prefetch=0,
            grid=grid,
            in_specs=[
                pl.BlockSpec((TB, D), lambda i: (i, 0)),   # x tile, pipelined over batch
                pl.BlockSpec((D, H), lambda i: (0, 0)),    # w1 resident in VMEM
                pl.BlockSpec((1, H), lambda i: (0, 0)),    # b1 resident
                pl.BlockSpec((H, A), lambda i: (0, 0)),    # w2 resident (full-width A)
                pl.BlockSpec((1, A), lambda i: (0, 0)),    # b2 resident
            ],
            out_specs=pl.BlockSpec((TB, A), lambda i: (i, 0)),  # narrow, no padding
        ),
        compiler_params=pltpu.CompilerParams(
            dimension_semantics=("parallel",)),  # shards batch tiles across TCs on v7x
    )(x, w1, b1_2d, w2, b2_2d)

    if B_pad != B:
        out = out[:B]
    return out


def kaiming_uniform(key, fan_in, shape, dtype=jnp.float32):
    """Kaiming-uniform-style init (host-side parameter parity helper)."""
    gain = jnp.sqrt(2.0)
    bound = gain * jnp.sqrt(3.0 / fan_in)
    return jax.random.uniform(key, shape, dtype, minval=-bound, maxval=bound)


def reference_f32(x, w1, b1, w2, b2):
    """Full-f32 reference (matches the PyTorch module semantics)."""
    h = jnp.maximum(x @ w1 + b1, 0.0)
    return h @ w2 + b2


if __name__ == "__main__":
    key = jax.random.PRNGKey(0)
    k_x, k_w1, k_w2 = jax.random.split(key, 3)

    batch = 8
    state_dim = 16
    hidden = 64
    nb_actions = 4

    # Deterministic parameter init (kaiming-uniform weights, zero biases),
    # stored transposed relative to PyTorch ((in, out) instead of (out, in)).
    w1 = kaiming_uniform(k_w1, state_dim, (state_dim, hidden))
    b1 = jnp.zeros((hidden,), jnp.float32)
    w2 = kaiming_uniform(k_w2, hidden, (hidden, nb_actions))
    b2 = jnp.zeros((nb_actions,), jnp.float32)

    x = jax.random.normal(k_x, (batch, state_dim), jnp.float32)

    out = qnetwork_forward(x, w1, b1, w2, b2)
    out = jax.block_until_ready(out)

    ref = reference_f32(x, w1, b1, w2, b2)

    assert out.shape == (batch, nb_actions), out.shape
    assert jnp.allclose(out, ref, atol=1e-4, rtol=1e-4), "mismatch vs f32 reference"

    print("KERNEL_OK")
</pallas_src>

<mosaic_0001>
module attributes {stable_mosaic.version = 11 : i64} {
  func.func @_qnet_kernel(%arg0: i32, %arg1: memref<16x16xf32, #tpu.memory_space<vmem>>, %arg2: memref<16x64xf32, #tpu.memory_space<vmem>>, %arg3: memref<1x64xf32, #tpu.memory_space<vmem>>, %arg4: memref<64x4xf32, #tpu.memory_space<vmem>>, %arg5: memref<1x4xf32, #tpu.memory_space<vmem>>, %arg6: memref<16x4xf32, #tpu.memory_space<vmem>>) attributes {dimension_semantics = [#tpu.dimension_semantics<parallel>], iteration_bounds = array<i64: 1>, scalar_prefetch = 0 : i64, scratch_operands = 0 : i64, tpu.core_type = #tpu.core_type<tc>, window_params = [{transform_indices = @transform_0, window_bounds = array<i64: 16, 16>}, {pipeline_mode = #tpu.pipeline_mode<synchronous>, transform_indices = @transform_1, window_bounds = array<i64: 16, 64>}, {pipeline_mode = #tpu.pipeline_mode<synchronous>, transform_indices = @transform_2, window_bounds = array<i64: 1, 64>}, {pipeline_mode = #tpu.pipeline_mode<synchronous>, transform_indices = @transform_3, window_bounds = array<i64: 64, 4>}, {pipeline_mode = #tpu.pipeline_mode<synchronous>, transform_indices = @transform_4, window_bounds = array<i64: 1, 4>}, {transform_indices = @transform_5, window_bounds = array<i64: 16, 4>}]} {
    %c0 = arith.constant 0 : index
    %c0_0 = arith.constant 0 : index
    %0 = vector.load %arg1[%c0, %c0_0] : memref<16x16xf32, #tpu.memory_space<vmem>>, vector<16x16xf32>
    %c0_1 = arith.constant 0 : index
    %c0_2 = arith.constant 0 : index
    %1 = vector.load %arg2[%c0_1, %c0_2] : memref<16x64xf32, #tpu.memory_space<vmem>>, vector<16x64xf32>
    %cst = arith.constant dense<0.000000e+00> : vector<16x64xf32>
    %2 = tpu.matmul %0, %1, %cst {dimension_numbers = #tpu.dot_dimension_numbers<[1], [0], [0], [1], [0, 0, 1, 1], [], []>} : vector<16x16xf32>, vector<16x64xf32>, vector<16x64xf32> -> vector<16x64xf32>
    %c0_3 = arith.constant 0 : index
    %c0_4 = arith.constant 0 : index
    %3 = vector.load %arg3[%c0_3, %c0_4] : memref<1x64xf32, #tpu.memory_space<vmem>>, vector<1x64xf32>
    %4 = vector.broadcast %3 : vector<1x64xf32> to vector<16x64xf32>
    %5 = arith.addf %2, %4 : vector<16x64xf32>
    %cst_5 = arith.constant 0.000000e+00 : f32
    %6 = vector.broadcast %cst_5 : f32 to vector<16x64xf32>
    %7 = arith.maximumf %5, %6 : vector<16x64xf32>
    %c0_6 = arith.constant 0 : index
    %c0_7 = arith.constant 0 : index
    %8 = vector.load %arg4[%c0_6, %c0_7] : memref<64x4xf32, #tpu.memory_space<vmem>>, vector<64x4xf32>
    %cst_8 = arith.constant dense<0.000000e+00> : vector<16x4xf32>
    %9 = tpu.matmul %7, %8, %cst_8 {dimension_numbers = #tpu.dot_dimension_numbers<[1], [0], [0], [1], [0, 0, 1, 1], [], []>} : vector<16x64xf32>, vector<64x4xf32>, vector<16x4xf32> -> vector<16x4xf32>
    %c0_9 = arith.constant 0 : index
    %c0_10 = arith.constant 0 : index
    %10 = vector.load %arg5[%c0_9, %c0_10] : memref<1x4xf32, #tpu.memory_space<vmem>>, vector<1x4xf32>
    %11 = vector.broadcast %10 : vector<1x4xf32> to vector<16x4xf32>
    %12 = arith.addf %9, %11 : vector<16x4xf32>
    %c0_11 = arith.constant 0 : index
    %c0_12 = arith.constant 0 : index
    %13 = vector.load %arg6[%c0_11, %c0_12] : memref<16x4xf32, #tpu.memory_space<vmem>>, vector<16x4xf32>
    tpu.vector_store %arg6[%c0_11, %c0_12], %12 {strides = array<i32>} : memref<16x4xf32, #tpu.memory_space<vmem>>, vector<16x4xf32>,
    return
  }
  func.func @transform_0(%arg0: i32) -> (i32, i32) {
    %c0_i32 = arith.constant 0 : i32
    %c0_i32_0 = arith.constant 0 : i32
    return %arg0, %c0_i32 : i32, i32
  }
  func.func @transform_1(%arg0: i32) -> (i32, i32) {
    %c0_i32 = arith.constant 0 : i32
    %c0_i32_0 = arith.constant 0 : i32
    %c0_i32_1 = arith.constant 0 : i32
    return %c0_i32, %c0_i32_0 : i32, i32
  }
  func.func @transform_2(%arg0: i32) -> (i32, i32) {
    %c0_i32 = arith.constant 0 : i32
    %c0_i32_0 = arith.constant 0 : i32
    %c0_i32_1 = arith.constant 0 : i32
    return %c0_i32, %c0_i32_0 : i32, i32
  }
  func.func @transform_3(%arg0: i32) -> (i32, i32) {
    %c0_i32 = arith.constant 0 : i32
    %c0_i32_0 = arith.constant 0 : i32
    %c0_i32_1 = arith.constant 0 : i32
    return %c0_i32, %c0_i32_0 : i32, i32
  }
  func.func @transform_4(%arg0: i32) -> (i32, i32) {
    %c0_i32 = arith.constant 0 : i32
    %c0_i32_0 = arith.constant 0 : i32
    %c0_i32_1 = arith.constant 0 : i32
    return %c0_i32, %c0_i32_0 : i32, i32
  }
  func.func @transform_5(%arg0: i32) -> (i32, i32) {
    %c0_i32 = arith.constant 0 : i32
    %c0_i32_0 = arith.constant 0 : i32
    return %arg0, %c0_i32 : i32, i32
  }
}

</mosaic_0001>

<bundles_post_ra>
// kernel: qnetwork_forward.1
= control target key start
LH: loop header
LB: loop body
LE: loop exit
PB: predicated region body
PF: predicated region fallthrough
CT: control target
= control target key end

     0   :  { %vm28_vm0 = vcmask 130048   ;;  %vm72_vm1 = vcmask 523264   ;;  %vm102_vm2 = vcmask 31744   ;;  %s203_s1 = inlined_call_operand.vmem [shape: f32[16,64], index: 1, kind: input, shape index: {}]   ;;  %s204_s0 = inlined_call_operand.vmem [shape: f32[16,16], index: 0, kind: input, shape index: {}]   ;;  %s205_s3 = inlined_call_operand.vmem [shape: f32[64,4], index: 3, kind: input, shape index: {}]   ;;  %s206_s2 = inlined_call_operand.vmem [shape: f32[1,64], index: 2, kind: input, shape index: {}]   ;;  %s207_s4 = inlined_call_operand.vmem [shape: f32[1,4], index: 4, kind: input, shape index: {}]   ;;  %s208_s5 = inlined_call_operand.vmem [shape: f32[16,4], index: 5, kind: output, shape index: {}]  }
   0x1   :  { %v23_v0 = vld [vmem:[%s203_s1 + $0x8] sm:$0xff]  ;;  %v22_v1 = vld [vmem:[%s203_s1] sm:$0xff]  ;;  %v67_v3 = vld [vmem:[%s205_s3 + $0x38] sm:$0xff] }
   0x2   :  { %49 = vmatpush.msra.mxu0 %v23_v0  ;;  %v20_v2 = vld [vmem:[%s204_s0] sm:$0xff]  ;;  %v66_v4 = vld [vmem:[%s205_s3 + $0x30] sm:$0xff]  ;;  %87 = vmatpush.msra.mxu1 %v67_v3  ;;  %v65_v5 = vld [vmem:[%s205_s3 + $0x28] sm:$0xff] }
   0x3   :  { %113 = vmatpush.msra.mxu2 %v67_v3  ;;  %v64_v6 = vld [vmem:[%s205_s3 + $0x20] sm:$0xff]  ;;  %v63_v7 = vld [vmem:[%s205_s3 + $0x18] sm:$0xff]  ;;  %v21_v8 = vld [vmem:[%s204_s0 + $0x8] sm:$0xff] }
   0x4   :  { %50 = vmatpush.msra.mxu0 %v22_v1  ;;  %88 = vmatpush.msra.mxu1 %v66_v4  ;;  %v62_v9 = vld [vmem:[%s205_s3 + $0x10] sm:$0xff]  ;;  %v61_v10 = vld [vmem:[%s205_s3 + $0x8] sm:$0xff]  ;;  %v60_v11 = vld [vmem:[%s205_s3] sm:$0xff] }
   0x5   :  { %109 = vmatmul.msk.f32.vlgmr.msra.gmra.mxu0 %vm28_vm0, %v20_v2  ;;  %114 = vmatpush.msra.mxu2 %v66_v4  ;;  %v121_v12 = vld [vmem:[%s206_s2] ss:$0 sm:$0xff] }
   0x6   :  { %89 = vmatpush.msra.mxu1 %v65_v5  ;;  %v122_v19 = vld [vmem:[%s207_s4] ss:$0 sm:$0xff] }
   0x7   :  { %115 = vmatpush.msra.mxu2 %v65_v5 }
   0x8   :  { %90 = vmatpush.msra.mxu1 %v64_v6 }
   0x9   :  { %116 = vmatpush.msra.mxu2 %v64_v6 }
   0xa   :  { %91 = vmatpush.msra.mxu1 %v63_v7 }
   0xb   :  { %117 = vmatpush.msra.mxu2 %v63_v7 }
   0xc   :  { %92 = vmatpush.msra.mxu1 %v62_v9 }
   0xd   :  { %110 = vmatmul.msk.f32.gmra.mxu0 %vm28_vm0, %v21_v8  ;;  %118 = vmatpush.msra.mxu2 %v62_v9 }
   0xe   :  { %93 = vmatpush.msra.mxu1 %v61_v10 }
   0xf   :  { %119 = vmatpush.msra.mxu2 %v61_v10 }
  0x10   :  { %94 = vmatpush.msra.mxu1 %v60_v11 }
  0x11   :  { %120 = vmatpush.msra.mxu2 %v60_v11 }
  0x82   :  { %v52_v13 = vpop.f32.mrf.mxu0 }
  0x83   :  { %v53_v14 = vadd.f32 %v121_v12, %v52_v13 }
  0x85   :  { %v58_v15 = vmax.f32 %v53_v14, 0.0 }
  0x87   :  { %111 = vmatmul.msk.f32.vlgmr.msra.gmra.mxu1 %vm72_vm1, %v58_v15 }
  0x8a   :  { %v55_v16 = vpop.f32.mrf.mxu0 }
  0x8b   :  { %v56_v17 = vadd.f32 %v121_v12, %v55_v16 }
  0x8d   :  { %v59_v18 = vmax.f32 %v56_v17, 0.0 }
  0x8f   :  { %112 = vmatmul.msk.f32.vlgmr.msra.gmra.mxu2 %vm72_vm1, %v59_v18 }
 0x104   :  { %v96_v20 = vpop.f32.mrf.mxu1 }
 0x105   :  { %v97_v21 = vadd.f32 %v122_v19, %v96_v20 }
 0x107   :  { %103 = vst.msk [vmem:[%s208_s5] sm:$0xff] %vm102_vm2, %v97_v21 }
 0x112   :  { %v99_v22 = vpop.f32.mrf.mxu2 }
 0x113   :  { %v100_v23 = vadd.f32 %v122_v19, %v99_v22 }
 0x115   :  { %104 = vst.msk [vmem:[%s208_s5 + $0x8] sm:$0xff] %vm102_vm2, %v100_v23 }

</bundles_post_ra>
